<compile_context>
chip_gen: v7x
topology: tpu7x:2x2x1
jax: 0.10.0
libtpu: 0.0.40
codegen_flags: <defaults>
</compile_context>

<pallas_src>
import jax
import jax.numpy as jnp
from jax.experimental import pallas as pl
from jax.experimental.pallas import tpu as pltpu

_PB_MAX = 32768  # max lanes per grid block (multiple of 128)


def _round_up(v, m):
    return ((v + m - 1) // m) * m


def _fused_kernel(params_ref, w_ref, consts_ref, x1_ref, x3_ref, x4_ref, o_ref):
    """params: (3,) SMEM [min, max, 4*min(min,max)];
    w:      (3, 8, 8) VMEM  (branch, out_channel padded 3->8, in_channel);
    consts: (8, 4)    VMEM  columns [bias_x1, bias_x3, bias_x4, A] per channel (padded);
    x*:     (8, pb)   VMEM;   o: (3, pb) VMEM.
    """
    mn = params_ref[0]
    mx = params_ref[1]
    dd = params_ref[2]
    consts = consts_ref[...]                       # (8, 4); rows 3..7 are zero padding

    acc = consts[:, 3:4]                           # A_c = clamp_min(conv_x2)_c + 4*min
    x_refs = (x1_ref, x3_ref, x4_ref)
    for i in range(3):                             # branches x1, x3, x4
        a = x_refs[i][...]                         # (8, pb): each block loaded once
        p = jnp.dot(w_ref[i], a,                   # (8, pb) on the MXU
                    preferred_element_type=jnp.float32,
                    precision=jax.lax.Precision.HIGHEST)
        acc = acc + jnp.maximum(p + consts[:, i:i + 1], mn)   # bias + clamp_min
    out = jnp.minimum(jnp.minimum(acc, mx) + dd, mx)          # v13 / v18 epilogue
    o_ref[...] = out[:3, :]                        # single store of the real channels


def model_forward(x1, x2, x3, x4, w_all, b_all, *, min_value=0.0, max_value=0.0):
    n, cin, h, w_sp = x1.shape
    assert n == 1 and cin == 8
    assert x3.shape == x1.shape and x4.shape == x1.shape
    # x2 must crop to 1x1 so its branch broadcasts (as the module's sum requires).
    assert x2.shape == (1, 8, 3, 3)

    hw = h * w_sp
    mn = jnp.asarray(min_value, jnp.float32)
    mx = jnp.asarray(max_value, jnp.float32)
    dd = 4.0 * jnp.minimum(mn, mx)                           # v14 + v15 + v16 + v17
    params = jnp.stack([mn, mx, dd]).astype(jnp.float32)     # (3,) -> SMEM

    # x2 branch: the crop leaves a single pixel -> 3 per-channel constants.
    x2c = x2[0, :, 1, 1]                                     # (8,)
    a_const = jnp.maximum(x2c @ w_all[1] + b_all[1], mn) + 4.0 * mn      # (3,)

    # Per-channel columns [bias(x1), bias(x3), bias(x4), A], sublane-padded to 8 rows.
    consts = jnp.stack([b_all[0], b_all[2], b_all[3], a_const], axis=1)  # (3, 4)
    consts = jnp.pad(consts, ((0, 5), (0, 0))).astype(jnp.float32)       # (8, 4)

    # MXU LHS per branch: (out_channels padded 3->8, in_channels=8).
    w3 = jnp.stack([w_all[0], w_all[2], w_all[3]])                        # (3, 8, 3)
    w_lhs = jnp.transpose(w3, (0, 2, 1))                                  # (3, 3, 8)
    w_lhs = jnp.pad(w_lhs, ((0, 0), (0, 5), (0, 0))).astype(jnp.float32)  # (3, 8, 8)

    # Free reshapes (no copies): NCHW with N=1 -> channel-major (8, H*W).
    x1f = x1.reshape(8, hw)
    x3f = x3.reshape(8, hw)
    x4f = x4.reshape(8, hw)

    # Large lane-dense blocks, but >= 2 blocks whenever hw allows so the "parallel"
    # grid axis can be sharded across both v7x TensorCores.
    pb = min(_round_up(pl.cdiv(hw, 2), 128), _PB_MAX)
    if pb >= hw:
        pb = hw
    grid = (pl.cdiv(hw, pb),)

    out_flat = pl.pallas_call(
        _fused_kernel,
        out_shape=jax.ShapeDtypeStruct((3, hw), jnp.float32),
        grid=grid,
        in_specs=[
            pl.BlockSpec(memory_space=pltpu.MemorySpace.SMEM),    # params (3,)
            pl.BlockSpec((3, 8, 8), lambda p: (0, 0, 0)),         # resident weights
            pl.BlockSpec((8, 4), lambda p: (0, 0)),               # resident biases + A
            pl.BlockSpec((8, pb), lambda p: (0, p)),
            pl.BlockSpec((8, pb), lambda p: (0, p)),
            pl.BlockSpec((8, pb), lambda p: (0, p)),
        ],
        out_specs=pl.BlockSpec((3, pb), lambda p: (0, p)),
        compiler_params=pltpu.CompilerParams(dimension_semantics=("parallel",)),
    )(params, w_lhs, consts, x1f, x3f, x4f)

    # Crop the 1-pixel border (ConvTranspose2d padding=1) from the 3-channel output.
    return out_flat.reshape(3, h, w_sp)[None, :, 1:-1, 1:-1]


def reference_forward(x1, x2, x3, x4, w_all, b_all, *, min_value, max_value):
    """Pure-JAX reference mirroring the PyTorch forward op-for-op."""
    def conv_t(x, i):
        xc = x[:, :, 1:-1, 1:-1]
        y = jnp.einsum('nchw,co->nohw', xc, w_all[i])
        return y + b_all[i][None, :, None, None]

    v1, v2, v3, v4 = (conv_t(x1, 0), conv_t(x2, 1), conv_t(x3, 2), conv_t(x4, 3))
    v5, v6, v7, v8 = (jnp.maximum(v, min_value) for v in (v1, v2, v3, v4))
    v9, v10, v11, v12 = (jnp.minimum(v, min_value) for v in (v5, v6, v7, v8))
    v13 = jnp.minimum(v5 + v6 + v7 + v8 + v9 + v10 + v11 + v12, max_value)
    v14, v15, v16, v17 = (jnp.minimum(v, max_value) for v in (v9, v10, v11, v12))
    return jnp.minimum(v13 + v14 + v15 + v16 + v17, max_value)


if __name__ == "__main__":
    key = jax.random.PRNGKey(0)
    k1, k2, k3, k4, kw, kb, k5, k6, k7 = jax.random.split(key, 9)

    x1 = jax.random.normal(k1, (1, 8, 16, 16), jnp.float32)
    x2 = jax.random.normal(k2, (1, 8, 3, 3), jnp.float32)   # crops to the 1x1 branch
    x3 = jax.random.normal(k3, (1, 8, 16, 16), jnp.float32)
    x4 = jax.random.normal(k4, (1, 8, 16, 16), jnp.float32)

    # ConvTranspose2d(8, 3, 1) weights (in=8, out=3, 1, 1) stored as (8, 3) per branch.
    w_all = 0.1 * jax.random.normal(kw, (4, 8, 3), jnp.float32)
    b_all = 0.1 * jax.random.normal(kb, (4, 3), jnp.float32)

    # Module's evident intent: min_value = max_value = 0.
    out = model_forward(x1, x2, x3, x4, w_all, b_all, min_value=0.0, max_value=0.0)
    out = jax.block_until_ready(out)
    ref = reference_forward(x1, x2, x3, x4, w_all, b_all, min_value=0.0, max_value=0.0)
    assert out.shape == (1, 3, 14, 14), out.shape
    assert jnp.allclose(out, ref, atol=1e-4, rtol=1e-4)

    # Full fused clamp chain with non-degenerate bounds (same compiled kernel: the
    # bounds are runtime SMEM scalars, not baked constants).
    out2 = model_forward(x1, x2, x3, x4, w_all, b_all, min_value=-0.25, max_value=0.5)
    out2 = jax.block_until_ready(out2)
    ref2 = reference_forward(x1, x2, x3, x4, w_all, b_all,
                             min_value=-0.25, max_value=0.5)
    assert jnp.allclose(out2, ref2, atol=1e-4, rtol=1e-4)

    # A spatial size whose flat H*W is not a multiple of the block size, to exercise
    # the padded / masked final partial block.
    y1 = jax.random.normal(k5, (1, 8, 18, 18), jnp.float32)
    y3 = jax.random.normal(k6, (1, 8, 18, 18), jnp.float32)
    y4 = jax.random.normal(k7, (1, 8, 18, 18), jnp.float32)
    out3 = model_forward(y1, x2, y3, y4, w_all, b_all, min_value=-0.25, max_value=0.5)
    out3 = jax.block_until_ready(out3)
    ref3 = reference_forward(y1, x2, y3, y4, w_all, b_all,
                             min_value=-0.25, max_value=0.5)
    assert out3.shape == (1, 3, 16, 16), out3.shape
    assert jnp.allclose(out3, ref3, atol=1e-4, rtol=1e-4)

    print("KERNEL_OK")
</pallas_src>

<mosaic_0001>
module attributes {stable_mosaic.version = 11 : i64} {
  func.func @_fused_kernel(%arg0: i32, %arg1: memref<3xf32, #tpu.memory_space<smem>>, %arg2: memref<3x8x8xf32, #tpu.memory_space<vmem>>, %arg3: memref<8x4xf32, #tpu.memory_space<vmem>>, %arg4: memref<8x128xf32, #tpu.memory_space<vmem>>, %arg5: memref<8x128xf32, #tpu.memory_space<vmem>>, %arg6: memref<8x128xf32, #tpu.memory_space<vmem>>, %arg7: memref<3x128xf32, #tpu.memory_space<vmem>>) attributes {dimension_semantics = [#tpu.dimension_semantics<parallel>], iteration_bounds = array<i64: 2>, scalar_prefetch = 0 : i64, scratch_operands = 0 : i64, tpu.core_type = #tpu.core_type<tc>, window_params = [{transform_indices = @transform_0, window_bounds = array<i64: 3>}, {pipeline_mode = #tpu.pipeline_mode<synchronous>, transform_indices = @transform_1, window_bounds = array<i64: 3, 8, 8>}, {pipeline_mode = #tpu.pipeline_mode<synchronous>, transform_indices = @transform_2, window_bounds = array<i64: 8, 4>}, {transform_indices = @transform_3, window_bounds = array<i64: 8, 128>}, {transform_indices = @transform_4, window_bounds = array<i64: 8, 128>}, {transform_indices = @transform_5, window_bounds = array<i64: 8, 128>}, {transform_indices = @transform_6, window_bounds = array<i64: 3, 128>}]} {
    %c0 = arith.constant 0 : index
    %0 = memref.load %arg1[%c0] : memref<3xf32, #tpu.memory_space<smem>>
    %c1 = arith.constant 1 : index
    %1 = memref.load %arg1[%c1] : memref<3xf32, #tpu.memory_space<smem>>
    %c2 = arith.constant 2 : index
    %2 = memref.load %arg1[%c2] : memref<3xf32, #tpu.memory_space<smem>>
    %c0_0 = arith.constant 0 : index
    %c0_1 = arith.constant 0 : index
    %3 = vector.load %arg3[%c0_0, %c0_1] : memref<8x4xf32, #tpu.memory_space<vmem>>, vector<8x4xf32>
    %4 = vector.extract_strided_slice %3 {offsets = [0, 3], sizes = [8, 1], strides = [1, 1]} : vector<8x4xf32> to vector<8x1xf32>
    %c0_2 = arith.constant 0 : index
    %c0_3 = arith.constant 0 : index
    %5 = vector.load %arg4[%c0_2, %c0_3] : memref<8x128xf32, #tpu.memory_space<vmem>>, vector<8x128xf32>
    %c0_4 = arith.constant 0 : index
    %c0_5 = arith.constant 0 : index
    %c0_6 = arith.constant 0 : index
    %6 = vector.load %arg2[%c0_4, %c0_5, %c0_6] : memref<3x8x8xf32, #tpu.memory_space<vmem>>, vector<1x8x8xf32>
    %7 = vector.shape_cast %6 : vector<1x8x8xf32> to vector<8x8xf32>
    %cst = arith.constant dense<0.000000e+00> : vector<8x128xf32>
    %8 = tpu.matmul %7, %5, %cst {dimension_numbers = #tpu.dot_dimension_numbers<[1], [0], [0], [1], [0, 0, 1, 1], [], []>, precision = #tpu.contract_precision<fp32>} : vector<8x8xf32>, vector<8x128xf32>, vector<8x128xf32> -> vector<8x128xf32>
    %9 = vector.extract_strided_slice %3 {offsets = [0, 0], sizes = [8, 1], strides = [1, 1]} : vector<8x4xf32> to vector<8x1xf32>
    %10 = vector.broadcast %9 : vector<8x1xf32> to vector<8x128xf32>
    %11 = arith.addf %8, %10 : vector<8x128xf32>
    %12 = vector.broadcast %0 : f32 to vector<8x128xf32>
    %13 = arith.maximumf %11, %12 : vector<8x128xf32>
    %14 = vector.broadcast %4 : vector<8x1xf32> to vector<8x128xf32>
    %15 = arith.addf %14, %13 : vector<8x128xf32>
    %c0_7 = arith.constant 0 : index
    %c0_8 = arith.constant 0 : index
    %16 = vector.load %arg5[%c0_7, %c0_8] : memref<8x128xf32, #tpu.memory_space<vmem>>, vector<8x128xf32>
    %c1_9 = arith.constant 1 : index
    %c0_10 = arith.constant 0 : index
    %c0_11 = arith.constant 0 : index
    %17 = vector.load %arg2[%c1_9, %c0_10, %c0_11] : memref<3x8x8xf32, #tpu.memory_space<vmem>>, vector<1x8x8xf32>
    %18 = vector.shape_cast %17 : vector<1x8x8xf32> to vector<8x8xf32>
    %cst_12 = arith.constant dense<0.000000e+00> : vector<8x128xf32>
    %19 = tpu.matmul %18, %16, %cst_12 {dimension_numbers = #tpu.dot_dimension_numbers<[1], [0], [0], [1], [0, 0, 1, 1], [], []>, precision = #tpu.contract_precision<fp32>} : vector<8x8xf32>, vector<8x128xf32>, vector<8x128xf32> -> vector<8x128xf32>
    %20 = vector.extract_strided_slice %3 {offsets = [0, 1], sizes = [8, 1], strides = [1, 1]} : vector<8x4xf32> to vector<8x1xf32>
    %21 = vector.broadcast %20 : vector<8x1xf32> to vector<8x128xf32>
    %22 = arith.addf %19, %21 : vector<8x128xf32>
    %23 = vector.broadcast %0 : f32 to vector<8x128xf32>
    %24 = arith.maximumf %22, %23 : vector<8x128xf32>
    %25 = arith.addf %15, %24 : vector<8x128xf32>
    %c0_13 = arith.constant 0 : index
    %c0_14 = arith.constant 0 : index
    %26 = vector.load %arg6[%c0_13, %c0_14] : memref<8x128xf32, #tpu.memory_space<vmem>>, vector<8x128xf32>
    %c2_15 = arith.constant 2 : index
    %c0_16 = arith.constant 0 : index
    %c0_17 = arith.constant 0 : index
    %27 = vector.load %arg2[%c2_15, %c0_16, %c0_17] : memref<3x8x8xf32, #tpu.memory_space<vmem>>, vector<1x8x8xf32>
    %28 = vector.shape_cast %27 : vector<1x8x8xf32> to vector<8x8xf32>
    %cst_18 = arith.constant dense<0.000000e+00> : vector<8x128xf32>
    %29 = tpu.matmul %28, %26, %cst_18 {dimension_numbers = #tpu.dot_dimension_numbers<[1], [0], [0], [1], [0, 0, 1, 1], [], []>, precision = #tpu.contract_precision<fp32>} : vector<8x8xf32>, vector<8x128xf32>, vector<8x128xf32> -> vector<8x128xf32>
    %30 = vector.extract_strided_slice %3 {offsets = [0, 2], sizes = [8, 1], strides = [1, 1]} : vector<8x4xf32> to vector<8x1xf32>
    %31 = vector.broadcast %30 : vector<8x1xf32> to vector<8x128xf32>
    %32 = arith.addf %29, %31 : vector<8x128xf32>
    %33 = vector.broadcast %0 : f32 to vector<8x128xf32>
    %34 = arith.maximumf %32, %33 : vector<8x128xf32>
    %35 = arith.addf %25, %34 : vector<8x128xf32>
    %36 = vector.broadcast %1 : f32 to vector<8x128xf32>
    %37 = arith.minimumf %35, %36 : vector<8x128xf32>
    %38 = vector.broadcast %2 : f32 to vector<8x128xf32>
    %39 = arith.addf %37, %38 : vector<8x128xf32>
    %40 = vector.broadcast %1 : f32 to vector<8x128xf32>
    %41 = arith.minimumf %39, %40 : vector<8x128xf32>
    %42 = vector.extract_strided_slice %41 {offsets = [0, 0], sizes = [3, 128], strides = [1, 1]} : vector<8x128xf32> to vector<3x128xf32>
    %c0_19 = arith.constant 0 : index
    %c0_20 = arith.constant 0 : index
    %43 = vector.load %arg7[%c0_19, %c0_20] : memref<3x128xf32, #tpu.memory_space<vmem>>, vector<3x128xf32>
    tpu.vector_store %arg7[%c0_19, %c0_20], %42 {strides = array<i32>} : memref<3x128xf32, #tpu.memory_space<vmem>>, vector<3x128xf32>,
    return
  }
  func.func @transform_0(%arg0: i32) -> i32 {
    %c0_i32 = arith.constant 0 : i32
    %c0_i32_0 = arith.constant 0 : i32
    return %c0_i32 : i32
  }
  func.func @transform_1(%arg0: i32) -> (i32, i32, i32) {
    %c0_i32 = arith.constant 0 : i32
    %c0_i32_0 = arith.constant 0 : i32
    %c0_i32_1 = arith.constant 0 : i32
    %c0_i32_2 = arith.constant 0 : i32
    return %c0_i32, %c0_i32_0, %c0_i32_1 : i32, i32, i32
  }
  func.func @transform_2(%arg0: i32) -> (i32, i32) {
    %c0_i32 = arith.constant 0 : i32
    %c0_i32_0 = arith.constant 0 : i32
    %c0_i32_1 = arith.constant 0 : i32
    return %c0_i32, %c0_i32_0 : i32, i32
  }
  func.func @transform_3(%arg0: i32) -> (i32, i32) {
    %c0_i32 = arith.constant 0 : i32
    %c0_i32_0 = arith.constant 0 : i32
    return %c0_i32, %arg0 : i32, i32
  }
  func.func @transform_4(%arg0: i32) -> (i32, i32) {
    %c0_i32 = arith.constant 0 : i32
    %c0_i32_0 = arith.constant 0 : i32
    return %c0_i32, %arg0 : i32, i32
  }
  func.func @transform_5(%arg0: i32) -> (i32, i32) {
    %c0_i32 = arith.constant 0 : i32
    %c0_i32_0 = arith.constant 0 : i32
    return %c0_i32, %arg0 : i32, i32
  }
  func.func @transform_6(%arg0: i32) -> (i32, i32) {
    %c0_i32 = arith.constant 0 : i32
    %c0_i32_0 = arith.constant 0 : i32
    return %c0_i32, %arg0 : i32, i32
  }
}

</mosaic_0001>

<bundles_post_ra>
// kernel: tpu_custom_call.1
= control target key start
LH: loop header
LB: loop body
LE: loop exit
PB: predicated region body
PF: predicated region fallthrough
CT: control target
= control target key end

     0   :  { %s2737_s0 = inlined_call_operand.vmem [shape: f32[3], index: 0, kind: input, shape index: {}]   ;;  %s2738_s1 = inlined_call_operand.hbm [shape: f32[3,8,8], index: 1, kind: input, shape index: {}]   ;;  %s2739_s2 = inlined_call_operand.vmem [shape: f32[8,4], index: 2, kind: input, shape index: {}]   ;;  %s2740_s3 = inlined_call_operand.vmem [shape: f32[8,256], index: 3, kind: input, shape index: {}]   ;;  %s2741_s4 = inlined_call_operand.hbm [shape: f32[8,256], index: 4, kind: input, shape index: {}]   ;;  %s2742_s5 = inlined_call_operand.hbm [shape: f32[8,256], index: 5, kind: input, shape index: {}]   ;;  %s2743_s6 = inlined_call_operand.hbm [shape: f32[3,256], index: 6, kind: output, shape index: {}]  }
   0x1   :  { %2748 = sst [smem:[#allocation16_spill]] %s2737_s0 }
   0x2   :  { %2749 = sst [smem:[#allocation17_spill]] %s2741_s4 }
   0x3   :  { %11 = vsyncpa [#allocation5], 0 }
   0x4   :  { %12 = vsyncpa [#allocation3], 0 }
   0x5   :  { %13 = vsyncpa [#allocation8], 0 }
   0x6   :  { %15 = vsyncpa [#allocation8 + $0x1], 0 }
   0x7   :  { %16 = vsyncpa [#allocation4], 0 }
   0x8   :  { %18 = vsyncpa [#allocation4 + $0x1], 0  ;;  %s2369_s21 = smov 0   ;;  %s2371_s22 = smov 0  }
   0x9   :  { %s2373_s23 = smov 0   ;;  %s2375_s24 = smov 0  }
   0xa LB: > { %s2390_s25 = sadd.s32 1, %s2319_s24   ;;  %s120_s26 = sadd.s32 1, %s2315_s23  ;;  %s2319_s24 = sphi %s2375_s24, %s2773_s24   ;;  %s2315_s23 = sphi %s2373_s23, %s2772_s23   ;;  %s2311_s22 = sphi %s2371_s22, %s2771_s22   ;;  %s2307_s21 = sphi %s2369_s21, %s2770_s21  }
   0xb   : > { %s117_s27 = ssub.s32 %s2319_s24, %s2390_s25  ;;  %p127_p0 = scmp.ne.s32.totalorder %s2315_s23, %s2311_s22 }
   0xc   : > { %p118_p1 = scmp.eq.s32.totalorder %s117_s27, 0  ;;  %p128_p2 = scmp.eq.s32.totalorder %s2319_s24, 0 }
   0xd   : > { %p2091_p4 = scmp.lt.s32.totalorder %s2319_s24, 2  ;;  %s243_s29 = sand.u32 1, %s2319_s24  }
   0xe   : > { %s2401_s28 = scalar_select %p118_p1, %s2315_s23, %s120_s26  }
   0xf   : > { %p129_p5 = por %p128_p2, %p127_p0  ;;  %s245_s30 = sand.u32 1, %s2315_s23  }
  0x10   : > { %2750 = sst [smem:[#allocation15_spill]] %s2401_s28  ;;  %s2408_s7 = sshll.u32 %s245_s30, 3 }
  0x11   : > { %s1883_s8 = sshll.u32 %s2319_s24, 7  ;;  %s2751_s4 = sld [smem:[#allocation17_spill]] }
  0x12   : > { %s247_s12 = scalar_lea.vmem [#allocation7], %s2408_s7  ;;  %p2419_p6 = pnand %p2091_p4, %p129_p5 }
  0x13   : > { %s254_s13 = sshll.u32 %s247_s12, 4  ;;  %s2425_s15 = scalar_lea.sflag [#allocation8], %s243_s29  ;;  %s2423_s13 = int_to_ptr.vmem [resolvable:$true] %s254_s13 }
  0x14   : > { %p2745_p8 = pneg %p2419_p6 }
  0x17   : > { %s2416_s11 = scalar_lea.hbm %s2751_s4, %s1883_s8  ;;  %s2147_s19 = scalar_lea.hbm %s2751_s4, 256 }
  0x18   : > { %s2142_s16 = scalar_lea.hbm %s2416_s11, 128  ;;  %p2148_p11 = scmp.lt.u32.totalorder %s2416_s11, %s2751_s4 }
  0x19   : > { %p2143_p7 = scmp.ne.s32.totalorder %s2416_s11, %s2142_s16  ;;  %p2149_p12 = scmp.lt.u32.totalorder %s2147_s19, %s2142_s16 }
  0x1a   : > { %p2151_p1 = scmp.lt.u32.totalorder %s2142_s16, %s2416_s11 }
  0x1b   : > { %p2145_p9 = pnand %p2745_p8, %p2143_p7  ;;  %p2150_p13 = por %p2149_p12, %p2148_p11 }
  0x1d   : > { %p2146_p10 = pneg %p2145_p9  ;;  %p2152_p2 = por %p2151_p1, %p2150_p13 }
  0x1f   : > { %p2153_p4 = pnand %p2152_p2, %p2146_p10 }
  0x21   : > { %2156 = shalt.err (!%p2153_p4)
}
  0x22   : > { %s2157_s27 = scalar_lea.vmem %s2423_s13, 128  ;;  %s2321_s29 = smov [#allocation7]  }
  0x23   : > { %p2158_p5 = scmp.ne.s32.totalorder %s2423_s13, %s2157_s27  ;;  %s2162_s30 = sshll.u32 %s2321_s29, 4  ;;  %s2163_s30 = int_to_ptr.vmem [resolvable:$false] %s2162_s30 }
  0x24   : > { %s2164_s9 = scalar_lea.vmem %s2163_s30, 256  ;;  %p2165_p3 = scmp.lt.s32.totalorder %s2423_s13, %s2163_s30 }
  0x25   : > { %p2160_p7 = pnand %p2158_p5, %p2745_p8  ;;  %p2166_p11 = scmp.lt.s32.totalorder %s2164_s9, %s2157_s27 }
  0x27   : > { %p2161_p9 = pneg %p2160_p7  ;;  %p2167_p12 = por %p2166_p11, %p2165_p3 }
  0x29   : > { %p2168_p13 = pnand %p2167_p12, %p2161_p9 }
  0x2b   : > { %2171 = shalt.err (!%p2168_p13)
}
  0x2c   : > { %2081 = dma.hbm_to_vmem [thread:$0]  (!%p2419_p6), %s2416_s11, 128, %s2423_s13, %s2425_s15  }
  0x2d   : > { %s2454_s10 = sadd.s32 4294967295, %s2319_s24   ;;  %s1877_s12 = sadd.s32 4294967294, %s2319_s24  }
  0x2e   : > { %p133_p3 = scmp.ne.s32.totalorder %s2311_s22, %s2307_s21  ;;  %p2744_p10 = scmp.eq.s32.totalorder %s2454_s10, 0 }
  0x2f   : > { %p183_p1 = scmp.eq.s32.totalorder %s2454_s10, 1  ;;  %p189_p2 = scmp.eq.s32.totalorder %s1877_s12, 1 }
  0x30   : > { %p2463_p4 = por %p2744_p10, %p133_p3  ;;  %p1878_p5 = scmp.ge.s32.totalorder %s2319_s24, 1 }
  0x31   : > { %p2471_p7 = por %p183_p1, %p127_p0  ;;  %p2475_p9 = por %p189_p2, %p133_p3 }
  0x32   : > { %s2753_s16 = scalar_select %p2463_p4, 1, 0 }
  0x33   : > { %s2754_s11 = scalar_select %p2471_p7, 1, 0 }
  0x34   : > { %s2755_s13 = scalar_select %p2475_p9, 1, 0 }
  0x35   : > { %p196_p11 = scmp.lt.s32.totalorder %s2319_s24, 3  ;;  %s2485_s19 = scalar_lea.hbm %s2742_s5, %s1883_s8 }
  0x36   : > { %s2757_s0 = sld [smem:[#allocation16_spill]]  ;;  %s2322_s30 = smov [#allocation6]  }
  0x37   : > { %p2487_p12 = pnand %p1878_p5, %p196_p11  ;;  %s219_s9 = sshll.u32 %s2322_s30, 4  ;;  %s2503_s9 = int_to_ptr.vmem [resolvable:$true] %s219_s9 }
  0x38   : > { %s265_s8 = scalar_lea.vmem [#allocation9], %s2408_s7 }
  0x39   : > { %p2071_p0 = pneg %p2487_p12  ;;  %s272_s17 = sshll.u32 %s265_s8, 4  ;;  %s2505_s17 = int_to_ptr.vmem [resolvable:$true] %s272_s17 }
  0x3b   : > { %p2498_p13 = pnand %p2071_p0, %p2744_p10 }
  0x3c   : > { %s209_s29 = sshll.u32 %s2757_s0, 4  ;;  %s210_s29 = int_to_ptr.vmem [resolvable:$true] %s209_s29 }
  0x3d   : > { %s2172_s18 = scalar_lea.vmem %s210_s29, 16  ;;  %p2174_p1 = pneg %p2498_p13 }
  0x3e   : > { %p2173_p3 = scmp.ne.s32.totalorder %s210_s29, %s2172_s18  ;;  %p2180_p11 = scmp.lt.s32.totalorder %s210_s29, %s210_s29 }
  0x3f   : > { %p2181_p0 = scmp.lt.s32.totalorder %s2172_s18, %s2172_s18 }
  0x40   : > { %p2175_p2 = pnand %p2174_p1, %p2173_p3 }
  0x41   : > { %p2182_p10 = por %p2181_p0, %p2180_p11 }
  0x42   : > { %p2176_p5 = pneg %p2175_p2 }
  0x44   : > { %p2183_p8 = pnand %p2182_p10, %p2176_p5 }
  0x46   : > { %2186 = shalt.err (!%p2183_p8)
}
  0x47   : > { %s2323_s26 = smov [#allocation2]   ;;  %s2187_s30 = scalar_lea.hbm %s2738_s1, 384 }
  0x48   : > { %2074 = dma.vmem_to_smem (!%p2498_p13), %s210_s29, 16, %s2323_s26, [#allocation5]  }
  0x49   : > { %p2188_p9 = scmp.ne.s32.totalorder %s2738_s1, %s2187_s30  ;;  %p2194_p8 = scmp.lt.u32.totalorder %s2187_s30, %s2738_s1 }
  0x4b   : > { %p2190_p3 = pnand %p2188_p9, %p2174_p1 }
  0x4d   : > { %p2191_p2 = pneg %p2190_p3 }
  0x4f   : > { %p2196_p10 = pnand %p2194_p8, %p2191_p2 }
  0x51   : > { %2199 = shalt.err (!%p2196_p10)
}
  0x52   : > { %s2200_s29 = scalar_lea.vmem %s2503_s9, 384  ;;  %p2208_p7 = scmp.lt.s32.totalorder %s2503_s9, %s2503_s9 }
  0x53   : > { %p2201_p5 = scmp.ne.s32.totalorder %s2503_s9, %s2200_s29  ;;  %p2209_p9 = scmp.lt.s32.totalorder %s2200_s29, %s2200_s29 }
  0x55   : > { %p2203_p11 = pnand %p2201_p5, %p2174_p1  ;;  %p2210_p3 = por %p2209_p9, %p2208_p7 }
  0x57   : > { %p2204_p0 = pneg %p2203_p11 }
  0x59   : > { %p2211_p4 = pnand %p2210_p3, %p2204_p0 }
  0x5b   : > { %2214 = shalt.err (!%p2211_p4)
}
  0x5c   : > { %s2324_s0 = smov 128   ;;  %s2325_s4 = smov 8  }
  0x5d   : > { %2077 = dma.hbm_to_vmem [thread:$0]  (!%p2498_p13), %s2738_s1, 384, %s2503_s9, [#allocation3], %s2324_s0, %s2324_s0, %s2325_s4  }
  0x5e   : > { %s2215_s27 = scalar_lea.hbm %s2485_s19, 128  ;;  %p2759_p7 = pneg %p2419_p6 }
  0x5f   : > { %p2216_p1 = scmp.ne.s32.totalorder %s2485_s19, %s2215_s27  ;;  %s2220_s18 = scalar_lea.hbm %s2742_s5, 256 }
  0x60   : > { %p2221_p8 = scmp.lt.u32.totalorder %s2485_s19, %s2742_s5  ;;  %p2222_p10 = scmp.lt.u32.totalorder %s2220_s18, %s2215_s27 }
  0x61   : > { %p2218_p2 = pnand %p2216_p1, %p2759_p7  ;;  %p2224_p11 = scmp.lt.u32.totalorder %s2215_s27, %s2485_s19 }
  0x62   : > { %p2223_p5 = por %p2222_p10, %p2221_p8 }
  0x63   : > { %p2219_p4 = pneg %p2218_p2 }
  0x64   : > { %p2225_p0 = por %p2224_p11, %p2223_p5 }
  0x66   : > { %p2226_p9 = pnand %p2225_p0, %p2219_p4 }
  0x68   : > { %2229 = shalt.err (!%p2226_p9)
}
  0x69   : > { %s2230_s9 = scalar_lea.vmem %s2505_s17, 128  ;;  %p2760_p3 = pmov %p2759_p7 }
  0x6a   : > { %p2231_p13 = scmp.ne.s32.totalorder %s2505_s17, %s2230_s9  ;;  %s2326_s12 = smov [#allocation9]  }
  0x6b   : > { %s2235_s0 = sshll.u32 %s2326_s12, 4  ;;  %s2236_s0 = int_to_ptr.vmem [resolvable:$false] %s2235_s0 }
  0x6c   : > { %p2233_p1 = pnand %p2231_p13, %p2760_p3  ;;  %s2237_s28 = scalar_lea.vmem %s2236_s0, 256 }
  0x6d   : > { %p2238_p2 = scmp.lt.s32.totalorder %s2505_s17, %s2236_s0  ;;  %p2239_p8 = scmp.lt.s32.totalorder %s2237_s28, %s2230_s9 }
  0x6e   : > { %p2234_p7 = pneg %p2233_p1 }
  0x6f   : > { %p2240_p10 = por %p2239_p8, %p2238_p2 }
  0x71   : > { %p2241_p5 = pnand %p2240_p10, %p2234_p7 }
  0x73   : > { %2244 = shalt.err (!%p2241_p5)
}
  0x74   : > { %2084 = dma.hbm_to_vmem [thread:$0]  (!%p2419_p6), %s2485_s19, 128, %s2505_s17, %s2425_s15  }
  0x75   : > { %281 = sbr.rel (%p2487_p12) target bundleno = 447 (0x1bf), region = 44  ;;  %p2761_p4 = scmp.eq.s32.totalorder (!%p2487_p12), %s2454_s10, 0 }
  0x7c   : > { %2290 = dma.done.wait (%p2761_p4), [#allocation5], 16   ;;  %p2762_p11 = pmov %p2761_p4 }
  0x7d   : > { %p2763_p0 = pmov %p2761_p4 }
  0x7e   : > { %2292 = vsyncadd (%p2762_p11), [#allocation5], 4294967280 }
  0x7f   : > { %2294 = dma.done.wait (%p2763_p0), [#allocation3], 384   ;;  %p2764_p9 = pmov %p2763_p0 }
  0x80   : > { %s291_s14 = sand.u32 1, %s2454_s10   ;;  %s2575_s15 = sand.u32 1, %s2311_s22  }
  0x81   : > { %2296 = vsyncadd (%p2764_p9), [#allocation3], 4294966912  ;;  %s1889_s19 = sshll.u32 %s2575_s15, 3  ;;  %s292_s20 = scalar_lea.sflag [#allocation8], %s291_s14 }
  0x82   : > { %s2578_s17 = scalar_lea.vmem [#allocation7], %s1889_s19  ;;  %p2765_p6 = scmp.ne.s32.totalorder %s2753_s16, 0 }
  0x84   : > { %2298 = dma.done.wait (%p2765_p6), %s292_s20, 256  }
  0x85   : > { %2300 = vsyncadd (%p2765_p6), %s292_s20, 4294967040  ;;  %s2584_s4 = scalar_lea.vmem [#allocation9], %s1889_s19 }
  0x86   : > { %309 = sfence }
  0x87   : > { %p343_p12 = scmp.lt.s32.totalorder %s2454_s10, 1  ;;  %v352_v0 = vld [vmem:[#allocation6] sm:$0xff]  ;;  %vm358_vm0 = vcmask 64512   ;;  %v2327_v1 = vmov 0.0   ;;  %vm2328_vm1 = vmmov 0   ;;  %v2329_v5 = vmov 0  }
  0x88   : > { %1950 = vmatprep.subr.mxu0 %v2327_v1  ;;  %1952 = vmatprep.mubr.msk.f32.mxu0 %vm2328_vm1, %v2327_v1  ;;  %v360_v2 = vsel %vm358_vm0, %v352_v0, 0  ;;  %v350_v4 = vld [vmem:[%s2739_s2] sm:$0xff]  ;;  %v1275_v7 = vld [vmem:[#allocation6 + $0x10] sm:$0xff]  ;;  %v2330_v8 = vmov 3   ;;  %v817_v11 = vld [vmem:[#allocation6 + $0x8] sm:$0xff]  ;;  %v2331_v16 = vmov 1  }
  0x89   : > { %s344_s26 = scalar_select %p343_p12, %s2454_s10, 1  ;;  %1935 = vmatprep.subr.mxu1 %v2327_v1  ;;  %v2593_v3 = vand.u32 4294901760, %v360_v2  ;;  %1937 = vmatprep.mubr.msk.f32.mxu1 %vm2328_vm1, %v2327_v1  ;;  %v1281_v13 = vsel %vm358_vm0, %v1275_v7, 0  ;;  %v1273_v15 = vld [vmem:[%s2584_s4] sm:$0xff]  ;;  %v823_v18 = vsel %vm358_vm0, %v817_v11, 0  ;;  %v815_v21 = vld [vmem:[%s2578_s17] sm:$0xff] }
  0x8a   : > { %2137 = vset.pattern.permute.xlu0 %v2329_v5  ;;  %2139 = vset.pattern.permute.xlu1 %v2330_v8  ;;  %v2612_v20 = vand.u32 4294901760, %v1281_v13  ;;  %v2618_v23 = vand.u32 4294901760, %v1273_v15  ;;  %v2620_v24 = vand.u32 4294901760, %v823_v18  ;;  %v2332_v25 = vmov 2   ;;  %s347_s29 = sld [smem:[#allocation2]]  ;;  %s1893_s9 = sld [smem:[#allocation2 + $0x1]] }
  0x8b   : > { %s1892_s27 = sshll.u32 %s344_s26, 3  ;;  %v2601_v6 = vsub.f32 %v360_v2, %v2593_v3  ;;  %355 = vperm.xlu0 %2137, %v350_v4   ;;  %811 = vperm.xlu1 %2139, %v350_v4   ;;  %v2624_v27 = vand.u32 4294901760, %v815_v21  ;;  %s1894_s12 = sld [smem:[#allocation2 + $0x2]] }
  0x8c   : > { %s346_s18 = scalar_lea.vmem %s2740_s3, %s1892_s27  ;;  %v1350_v28 = vsub.f32 %v1281_v13, %v2612_v20  ;;  %v1361_v30 = vsub.f32 %v1273_v15, %v2618_v23  ;;  %v892_v31 = vsub.f32 %v823_v18, %v2620_v24  ;;  %s1891_s0 = sshll.u32 %s2575_s15, 2 }
  0x8d   : > { %v351_v9 = vld [vmem:[%s346_s18] sm:$0xff]  ;;  %v430_v10 = vand.u32 4294901760, %v2601_v6  ;;  %v903_v32 = vsub.f32 %v815_v21, %v2624_v27  ;;  %s1896_s28 = sshll.u32 %s2454_s10, 6  ;;  %s342_s14 = scalar_lea.vmem [#allocation10], %s1891_s0 }
  0x8e   : > { %v363_v12 = vand.u32 4294901760, %v351_v9  ;;  %v1351_v33 = vand.u32 4294901760, %v1350_v28  ;;  %v1362_v34 = vand.u32 4294901760, %v1361_v30  ;;  %v893_v35 = vand.u32 4294901760, %v892_v31  ;;  %s1751_s19 = sshll.u32 %s342_s14, 4  ;;  %s2693_s4 = scalar_lea.hbm %s2743_s6, %s1896_s28  ;;  %s2695_s19 = int_to_ptr.vmem [resolvable:$true] %s1751_s19 }
  0x8f   : > { %v431_v14 = vsub.f32 %v2601_v6, %v430_v10  ;;  %2138 = vset.pattern.permute.xlu0 %v2331_v16  ;;  %2140 = vset.pattern.permute.xlu1 %v2332_v25  ;;  %v904_v36 = vand.u32 4294901760, %v903_v32  ;;  %s1738_s26 = scalar_lea.sflag [#allocation4], %s2575_s15  ;;  %s2245_s16 = scalar_lea.vmem %s2695_s19, 64 }
  0x90   : > { %v440_v17 = vsub.f32 %v351_v9, %v363_v12  ;;  %1951 = vmatpush3.msra.mxu0 %v363_v12  ;;  %1936 = vmatpush3.msra.mxu1 %v363_v12  ;;  %v1352_v37 = vsub.f32 %v1350_v28, %v1351_v33  ;;  %v1363_v38 = vsub.f32 %v1361_v30, %v1362_v34  ;;  %v808_v53 = vstv %s347_s29  ;;  %p2246_p13 = scmp.ne.s32.totalorder %s2695_s19, %s2245_s16  ;;  %p2766_p3 = scmp.ne.s32.totalorder %s2754_s11, 0 }
  0x91   : > { %1953 = vmatmul.mubr.f32.vlgmr.msra.gmra.mrb[0].mxu0 %v430_v10  ;;  %v432_v19 = vand.u32 4294901760, %v431_v14  ;;  %1940 = vmatprep.subr.mxu1 %v2327_v1  ;;  %v894_v39 = vsub.f32 %v892_v31, %v893_v35  ;;  %v905_v40 = vsub.f32 %v903_v32, %v904_v36  ;;  %v1733_v5 = vstv %s1894_s12  ;;  %s2333_s10 = smov [#allocation10]  }
  0x92   : > { %1955 = vmatprep.subr.mxu0 %v2327_v1  ;;  %v441_v22 = vand.u32 4294901760, %v440_v17  ;;  %1957 = vmatprep.mubr.msk.f32.mxu0 %vm2328_vm1, %v2327_v1  ;;  %v1353_v41 = vand.u32 4294901760, %v1352_v37  ;;  %v1364_v42 = vand.u32 4294901760, %v1363_v38  ;;  %p2247_p1 = pnand %p2246_p13, %p2766_p3  ;;  %s2249_s7 = sshll.u32 %s2333_s10, 4  ;;  %s2250_s7 = int_to_ptr.vmem [resolvable:$false] %s2249_s7 }
  0x93   : > { %1938 = vmatmul.mubr.f32.vlgmr.msra.gmra.mrb[0].mxu1 %v432_v19  ;;  %1277 = vperm.xlu1 %2140, %v350_v4   ;;  %v895_v43 = vand.u32 4294901760, %v894_v39  ;;  %v906_v44 = vand.u32 4294901760, %v905_v40  ;;  %s2251_s27 = scalar_lea.vmem %s2250_s7, 128  ;;  %p2252_p2 = scmp.lt.s32.totalorder %s2695_s19, %s2250_s7 }
  0x94   : > { %v442_v26 = vsub.f32 %v440_v17, %v441_v22  ;;  %1956 = vmatpush3.msra.mxu0 %v441_v22  ;;  %1942 = vmatprep.mubr.msk.f32.mxu1 %vm2328_vm1, %v2327_v1  ;;  %p2248_p7 = pneg %p2247_p1  ;;  %p2253_p8 = scmp.lt.s32.totalorder %s2251_s27, %s2245_s16 }
  0x95   : > { %1960 = vmatprep.subr.mxu0 %v2327_v1  ;;  %819 = vperm.xlu0 %2138, %v350_v4  }
  0x96   : > { %v443_v29 = vand.u32 4294901760, %v442_v26  ;;  %p2254_p10 = por %p2253_p8, %p2252_p2 }
  0x98   : > { %1941 = vmatpush3.msra.mxu1 %v443_v29  ;;  %p2255_p5 = pnand %p2254_p10, %p2248_p7 }
  0x99   : > { %1958 = vmatmul.mubr.f32.vlgmr.msra.gmra.mrb[0].mxu0 %v2593_v3  ;;  %1945 = vmatprep.subr.mxu1 %v2327_v1 }
  0x9a   : > { %1961 = vmatpush3.msra.mxu0 %v363_v12  ;;  %1962 = vmatprep.mubr.msk.f32.mxu0 %vm2328_vm1, %v2327_v1 }
  0x9b   : > { %1943 = vmatmul.mubr.f32.vlgmr.msra.gmra.mrb[0].mxu1 %v2593_v3  ;;  %1995 = vmatprep.subr.mxu0 %v2327_v1 }
  0x9c   : > { %1946 = vmatpush3.msra.mxu1 %v440_v17  ;;  %1947 = vmatprep.mubr.msk.f32.mxu1 %vm2328_vm1, %v2327_v1 }
  0x9d   : > { %1965 = vmatprep.subr.mxu1 %v2327_v1  ;;  %2141 = vset.pattern.permute.xlu0 %v2332_v25 }
  0xa1   : > { %1963 = vmatmul.mubr.f32.vlgmr.msra.gmra.mrb[0].mxu0 %v2593_v3  ;;  %v1731_v3 = vstv %s1893_s9 }
  0xa2   : > { %1996 = vmatpush3.msra.mxu0 %v2618_v23  ;;  %1997 = vmatprep.mubr.msk.f32.mxu0 %vm2328_vm1, %v2327_v1 }
  0xa3   : > { %1948 = vmatmul.mubr.f32.vlgmr.msra.gmra.mrb[0].mxu1 %v2601_v6  ;;  %2000 = vmatprep.subr.mxu0 %v2327_v1 }
  0xa4   : > { %1966 = vmatpush3.msra.mxu1 %v2624_v27  ;;  %1967 = vmatprep.mubr.msk.f32.mxu1 %vm2328_vm1, %v2327_v1 }
  0xa5   : > { %1998 = vmatmul.mubr.f32.vlgmr.msra.gmra.mrb[2].mxu0 %v1353_v41  ;;  %1970 = vmatprep.subr.mxu1 %v2327_v1 }
  0xa6   : > { %2001 = vmatpush3.msra.mxu0 %v1364_v42  ;;  %2002 = vmatprep.mubr.msk.f32.mxu0 %vm2328_vm1, %v2327_v1 }
  0xa7   : > { %1968 = vmatmul.mubr.f32.vlgmr.msra.gmra.mrb[2].mxu1 %v895_v43  ;;  %2005 = vmatprep.subr.mxu0 %v2327_v1 }
  0xa8   : > { %1971 = vmatpush3.msra.mxu1 %v906_v44  ;;  %1972 = vmatprep.mubr.msk.f32.mxu1 %vm2328_vm1, %v2327_v1 }
  0xa9   : > { %1975 = vmatprep.subr.mxu1 %v2327_v1 }
  0xad   : > { %2003 = vmatmul.mubr.f32.vlgmr.msra.gmra.mrb[2].mxu0 %v2612_v20 }
  0xae   : > { %2006 = vmatpush3.msra.mxu0 %v1361_v30  ;;  %2007 = vmatprep.mubr.msk.f32.mxu0 %vm2328_vm1, %v2327_v1 }
  0xaf   : > { %1973 = vmatmul.mubr.f32.vlgmr.msra.gmra.mrb[2].mxu1 %v2620_v24  ;;  %2010 = vmatprep.subr.mxu0 %v2327_v1 }
  0xb0   : > { %1976 = vmatpush3.msra.mxu1 %v903_v32  ;;  %1977 = vmatprep.mubr.msk.f32.mxu1 %vm2328_vm1, %v2327_v1 }
  0xb1   : > { %1980 = vmatprep.subr.mxu1 %v2327_v1 }
  0xb5   : > { %2008 = vmatmul.mubr.f32.vlgmr.msra.gmra.mrb[2].mxu0 %v1350_v28 }
  0xb6   : > { %2011 = vmatpush3.msra.mxu0 %v2618_v23  ;;  %2012 = vmatprep.mubr.msk.f32.mxu0 %vm2328_vm1, %v2327_v1 }
  0xb7   : > { %1978 = vmatmul.mubr.f32.vlgmr.msra.gmra.mrb[2].mxu1 %v892_v31  ;;  %2015 = vmatprep.subr.mxu0 %v2327_v1 }
  0xb8   : > { %1981 = vmatpush3.msra.mxu1 %v2624_v27  ;;  %1982 = vmatprep.mubr.msk.f32.mxu1 %vm2328_vm1, %v2327_v1 }
  0xb9   : > { %1985 = vmatprep.subr.mxu1 %v2327_v1 }
  0xbd   : > { %2013 = vmatmul.mubr.f32.vlgmr.msra.gmra.mrb[2].mxu0 %v1351_v33 }
  0xbe   : > { %2016 = vmatpush3.msra.mxu0 %v1362_v34  ;;  %2017 = vmatprep.mubr.msk.f32.mxu0 %vm2328_vm1, %v2327_v1 }
  0xbf   : > { %1983 = vmatmul.mubr.f32.vlgmr.msra.gmra.mrb[2].mxu1 %v893_v35  ;;  %2020 = vmatprep.subr.mxu0 %v2327_v1 }
  0xc0   : > { %1986 = vmatpush3.msra.mxu1 %v904_v36  ;;  %1987 = vmatprep.mubr.msk.f32.mxu1 %vm2328_vm1, %v2327_v1 }
  0xc1   : > { %1990 = vmatprep.subr.mxu1 %v2327_v1 }
  0xc5   : > { %2018 = vmatmul.mubr.f32.vlgmr.msra.gmra.mrb[2].mxu0 %v2612_v20 }
  0xc6   : > { %2021 = vmatpush3.msra.mxu0 %v2618_v23  ;;  %2022 = vmatprep.mubr.msk.f32.mxu0 %vm2328_vm1, %v2327_v1 }
  0xc7   : > { %1988 = vmatmul.mubr.f32.vlgmr.msra.gmra.mrb[2].mxu1 %v2620_v24 }
  0xc8   : > { %1991 = vmatpush3.msra.mxu1 %v2624_v27  ;;  %1992 = vmatprep.mubr.msk.f32.mxu1 %vm2328_vm1, %v2327_v1 }
  0xcd   : > { %2023 = vmatmul.mubr.f32.vlgmr.msra.gmra.mrb[2].mxu0 %v2612_v20 }
  0xcf   : > { %1993 = vmatmul.mubr.f32.vlgmr.msra.gmra.mrb[2].mxu1 %v2620_v24 }
 0x10a   : > { %v356_v46 = vpop.permute.xlu0 %355  ;;  %v812_v52 = vpop.permute.xlu1 %811 }
 0x112   : > { %v1278_v54 = vpop.permute.xlu1 %1277 }
 0x114   : > { %v820_v56 = vpop.permute.xlu0 %819 }
 0x174   : > { %v804_v45 = vpop.f32.mrb[0].mxu0 }
 0x175   : > { %v1964_v47 = vpop.f32.mrb[1].mxu0 }
 0x176   : > { %v584_v48 = vpop.f32.mrb[0].mxu1 }
 0x177   : > { %v2025_v49 = vadd.f32 %v584_v48, %v356_v46  ;;  %v1949_v50 = vpop.f32.mrb[1].mxu1 }
 0x179   : > { %v2026_v51 = vadd.f32 %v2025_v49, %v804_v45 }
 0x17b   : > { %v809_v57 = vmax.f32 %v2026_v51, %v808_v53 }
 0x17d   : > { %v814_v63 = vadd.f32 %v812_v52, %v809_v57 }
 0x1a0   : > { %v1725_v55 = vpop.f32.mrb[2].mxu0 }
 0x1a1   : > { %v2024_v58 = vpop.f32.mrb[3].mxu0  ;;  %v2028_v60 = vadd.f32 %v1725_v55, %v1278_v54 }
 0x1a2   : > { %v1267_v59 = vpop.f32.mrb[2].mxu1 }
 0x1a3   : > { %v2027_v61 = vadd.f32 %v1267_v59, %v820_v56  ;;  %v1994_v62 = vpop.f32.mrb[3].mxu1  ;;  %v1729_v1 = vmax.f32 %v2028_v60, %v808_v53 }
 0x1a5   : > { %v1271_v0 = vmax.f32 %v2027_v61, %v808_v53 }
 0x1a7   : > { %v1272_v2 = vadd.f32 %v1271_v0, %v814_v63 }
 0x1a9   : > { %v1730_v4 = vadd.f32 %v1729_v1, %v1272_v2 }
 0x1ab   : > { %v1732_v6 = vmin.f32 %v1730_v4, %v1731_v3 }
 0x1ad   : > { %v1734_v7 = vadd.f32 %v1733_v5, %v1732_v6 }
 0x1af   : > { %v1735_v8 = vmin.f32 %v1734_v7, %v1731_v3 }
 0x1b1   : > { %1736 = vst [vmem:[%s342_s14] sm:$0x7] %v1735_v8 }
 0x1b2   : > { %2258 = shalt.err (!%p2255_p5)
}
 0x1b3   : > { %s2259_s15 = scalar_lea.hbm %s2693_s4, 64  ;;  %s2263_s18 = scalar_lea.hbm %s2743_s6, 128 }
 0x1b4   : > { %p2260_p4 = scmp.ne.s32.totalorder %s2693_s4, %s2259_s15  ;;  %p2264_p9 = scmp.lt.u32.totalorder %s2693_s4, %s2743_s6 }
 0x1b5   : > { %p2265_p6 = scmp.lt.u32.totalorder %s2263_s18, %s2259_s15  ;;  %p2267_p13 = scmp.lt.u32.totalorder %s2259_s15, %s2693_s4 }
 0x1b6   : > { %p2261_p11 = pnand %p2260_p4, %p2766_p3 }
 0x1b7   : > { %p2266_p12 = por %p2265_p6, %p2264_p9 }
 0x1b8   : > { %p2262_p0 = pneg %p2261_p11 }
 0x1b9   : > { %p2268_p1 = por %p2267_p13, %p2266_p12 }
 0x1bb   : > { %p2269_p7 = pnand %p2268_p1, %p2262_p0 }
 0x1bd   : > { %2272 = shalt.err (!%p2269_p7)
}
 0x1be   : > { %2069 = dma.vmem_to_hbm [thread:$0]  (%p2766_p3), %s2695_s19, 64, %s2693_s4, %s1738_s26  }
 0x1bf PF: > { %s1763_s12 = sand.u32 1, %s2307_s21   ;;  %p2767_p2 = scmp.ne.s32.totalorder %s2755_s13, 0 }
 0x1c0   : > { %p2768_p8 = scmp.ge.s32.totalorder %s2319_s24, 2  ;;  %s1764_s0 = scalar_lea.sflag [#allocation4], %s1763_s12 }
 0x1c2   : > { %p2086_p10 = pnand %p2768_p8, %p2767_p2 }
 0x1c4   : > { %2302 = dma.done.wait (!%p2086_p10), %s1764_s0, 64  }
 0x1c5   : > { %2304 = vsyncadd (!%p2086_p10), %s1764_s0, 4294967232  ;;  %s2769_s28 = sld [smem:[#allocation15_spill]]  ;;  %p21_p5 = scmp.ge.s32.totalorder %s2390_s25, 4  }
 0x1c6   : > { %s2770_s21 = smov %s2311_s22  ;;  %s2771_s22 = smov %s2315_s23 }
 0x1c7   : > { %s2773_s24 = smov %s2390_s25  ;;  %23 = sbr.rel (!%p21_p5) target bundleno = 10 (0xa), region = 115 }
 0x1cb   : > { %s2772_s23 = smov %s2769_s28 }
 0x1ce   :  { %1769 = vsyncpa [#allocation3], 1 }
 0x1cf   :  { %1771 = vsyncpa [#allocation3 + $0x1], 1 }
 0x1d0   :  { %1772 = vsyncpa [#allocation8], 1 }
 0x1d1   :  { %1774 = vsyncpa [#allocation8 + $0x1], 1 }
 0x1d2   :  { %1775 = vsyncpa [#allocation4], 1 }
 0x1d3   :  { %1777 = vsyncpa [#allocation4 + $0x1], 1 }
 0x1d4   :  { %1778 = vsyncpa [#allocation5], 1 }
 0x1d5   :  { %1780 = vsyncpa [#allocation5 + $0x1], 1 }

</bundles_post_ra>
